<compile_context>
chip_gen: v7x
topology: tpu7x:2x2x1
jax: 0.10.0
libtpu: 0.0.40
codegen_flags: <defaults>
</compile_context>

<pallas_src>
import numpy as np
import jax
import jax.numpy as jnp
from jax.experimental import pallas as pl
from jax.experimental.pallas import tpu as pltpu

# ---------------- model dimensions (small demo sizes) ----------------
EMB_DIM      = 32
IN_CHANNEL   = 1
MEM_DIM      = 32
NUM_CLASSES  = 3
SEQ_LEN      = 8                      # number of tokens == number of leaves
CONV_FILTERS = (100, 100)
CONV_KSIZES  = (5, 3)
IN_DIM       = sum(CONV_FILTERS)      # 200, as hard-coded in TreeLSTMSentiment

VMEM_SPEC = pl.BlockSpec(memory_space=pltpu.MemorySpace.VMEM)


# ====================== host-side tree preprocessing ======================

def build_levels(left_ids, right_ids, n_leaves):
    """Group internal nodes (given in topological order) into bottom-up levels.

    Returns a list of levels; each level is a tuple of internal-node indices k
    (node id = n_leaves + k) whose children are all in strictly lower levels.
    """
    left_ids = [int(v) for v in left_ids]
    right_ids = [int(v) for v in right_ids]
    n_internal = len(left_ids)
    level = [0] * (n_leaves + n_internal)
    for k in range(n_internal):
        level[n_leaves + k] = 1 + max(level[left_ids[k]], level[right_ids[k]])
    if n_internal == 0:
        return []
    max_lv = max(level[n_leaves:])
    levels = []
    for lv in range(1, max_lv + 1):
        ks = tuple(k for k in range(n_internal) if level[n_leaves + k] == lv)
        levels.append(ks)
    return levels


def im2col_1d(x, k):
    """x: (seq, C, E) -> (seq, k*C*E) with 'same' zero padding along seq."""
    seq, C, E = x.shape
    pad_l = (k - 1) // 2
    pad_r = k - 1 - pad_l
    xp = jnp.pad(x, ((pad_l, pad_r), (0, 0), (0, 0)))
    windows = jnp.stack([xp[i:i + seq] for i in range(k)], axis=1)  # (seq,k,C,E)
    return windows.reshape(seq, k * C * E)


# ====================== fused forward (single kernel) ======================

def make_tree_forward(left_ids, right_ids, n_leaves):
    """Build a jitted forward for one static tree (structure baked at trace time)."""
    left_ids = [int(v) for v in left_ids]
    right_ids = [int(v) for v in right_ids]
    n_internal = len(left_ids)
    levels = build_levels(left_ids, right_ids, n_leaves)
    M = MEM_DIM

    def fused_kernel(x5_ref, w5_ref, b5_ref, x3_ref, w3_ref, b3_ref,
                     wl5_ref, wl3_ref, bleaf_ref, wlr_ref, bg_ref,
                     wout_ref, bout_ref, out_ref):
        f32 = jnp.float32

        # ---- MultiConvModule: two im2col matmuls + ReLU.
        # No concat of [y5 | y3]: the leaf matmul consumes them via split-K below.
        y5 = jnp.maximum(
            jnp.dot(x5_ref[...], w5_ref[...], preferred_element_type=f32) + b5_ref[...],
            0.0)
        y3 = jnp.maximum(
            jnp.dot(x3_ref[...], w3_ref[...], preferred_element_type=f32) + b3_ref[...],
            0.0)

        # ---- BinaryTreeLeafModule (all leaves batched).
        # One packed matmul producing [c | o_pre] (width 2*mem), wcx/wox fused.
        g = (jnp.dot(y5, wl5_ref[...], preferred_element_type=f32)
             + jnp.dot(y3, wl3_ref[...], preferred_element_type=f32)
             + bleaf_ref[...])
        c_leaf = g[:, 0:M]
        h_leaf = jax.nn.sigmoid(g[:, M:2 * M]) * jnp.tanh(c_leaf)

        # ---- BinaryTreeComposer, level-batched and fully unrolled (static tree).
        node_c = [c_leaf[i:i + 1, :] for i in range(n_leaves)] + [None] * n_internal
        node_h = [h_leaf[i:i + 1, :] for i in range(n_leaves)] + [None] * n_internal
        wlr = wlr_ref[...]          # (2*mem, 4*mem)  = stacked [wl; wr]
        bg = bg_ref[...]            # (1, 4*mem), gates packed as [i | lf | rf | u]
        for ks in levels:
            lh = jnp.concatenate([node_h[left_ids[k]] for k in ks], axis=0)
            rh = jnp.concatenate([node_h[right_ids[k]] for k in ks], axis=0)
            lc = jnp.concatenate([node_c[left_ids[k]] for k in ks], axis=0)
            rc = jnp.concatenate([node_c[right_ids[k]] for k in ks], axis=0)
            gates = jnp.dot(jnp.concatenate([lh, rh], axis=1), wlr,
                            preferred_element_type=f32) + bg
            gi  = jax.nn.sigmoid(gates[:, 0 * M:1 * M])
            glf = jax.nn.sigmoid(gates[:, 1 * M:2 * M])
            grf = jax.nn.sigmoid(gates[:, 2 * M:3 * M])
            gu  = jnp.tanh(gates[:, 3 * M:4 * M])
            c = gi * gu + glf * lc + grf * rc
            h = jnp.tanh(c)
            for j, k in enumerate(ks):
                node_c[n_leaves + k] = c[j:j + 1, :]
                node_h[n_leaves + k] = h[j:j + 1, :]
        root_h = node_h[n_leaves + n_internal - 1]

        # ---- SentimentModule (inference): LogSoftmax(Linear(root_h)).
        z = jnp.dot(root_h, wout_ref[...], preferred_element_type=f32) + bout_ref[...]
        m = jnp.max(z, axis=-1, keepdims=True)
        lse = jnp.log(jnp.sum(jnp.exp(z - m), axis=-1, keepdims=True)) + m
        out_ref[...] = z - lse

    def forward(x, params):
        # im2col layout prep (pure data movement, done once in XLA land)
        x5 = im2col_1d(x, CONV_KSIZES[0])
        x3 = im2col_1d(x, CONV_KSIZES[1])
        # weight packing (trace-time constants folding; done once per call)
        w_leaf = jnp.concatenate([params["wcx"], params["wox"]], axis=1)   # (200, 2*mem)
        wl5 = w_leaf[:CONV_FILTERS[0], :]                                   # (100, 2*mem)
        wl3 = w_leaf[CONV_FILTERS[0]:, :]                                   # (100, 2*mem)
        b_leaf = jnp.concatenate([params["bcx"], params["box"]], axis=1)    # (1, 2*mem)
        wlr = jnp.concatenate([params["wl"], params["wr"]], axis=0)         # (2*mem, 4*mem)

        output = pl.pallas_call(
            fused_kernel,
            out_shape=jax.ShapeDtypeStruct((1, NUM_CLASSES), jnp.float32),
            in_specs=[VMEM_SPEC] * 13,
            out_specs=VMEM_SPEC,
        )(x5, params["w5"], params["b5"], x3, params["w3"], params["b3"],
          wl5, wl3, b_leaf, wlr, params["bg"], params["wout"], params["bout"])

        loss = jnp.zeros((1,), jnp.float32)   # inference path: criterion never invoked
        return output, loss

    return jax.jit(forward)


# ======================== pure-JAX reference check ========================

def reference_forward(x, left_ids, right_ids, params):
    x5 = im2col_1d(x, CONV_KSIZES[0])
    x3 = im2col_1d(x, CONV_KSIZES[1])
    y5 = jax.nn.relu(x5 @ params["w5"] + params["b5"])
    y3 = jax.nn.relu(x3 @ params["w3"] + params["b3"])
    embs = jnp.concatenate([y5, y3], axis=-1)
    c = embs @ params["wcx"] + params["bcx"]
    h = jax.nn.sigmoid(embs @ params["wox"] + params["box"]) * jnp.tanh(c)
    state_c = [c[i] for i in range(SEQ_LEN)]
    state_h = [h[i] for i in range(SEQ_LEN)]
    for li, ri in zip(list(left_ids), list(right_ids)):
        lh, rh = state_h[li][None], state_h[ri][None]
        lc, rc = state_c[li][None], state_c[ri][None]
        g = lh @ params["wl"] + rh @ params["wr"] + params["bg"]
        gi  = jax.nn.sigmoid(g[:, 0 * MEM_DIM:1 * MEM_DIM])
        glf = jax.nn.sigmoid(g[:, 1 * MEM_DIM:2 * MEM_DIM])
        grf = jax.nn.sigmoid(g[:, 2 * MEM_DIM:3 * MEM_DIM])
        gu  = jnp.tanh(g[:, 3 * MEM_DIM:4 * MEM_DIM])
        cc = gi * gu + glf * lc + grf * rc
        state_c.append(cc[0]); state_h.append(jnp.tanh(cc)[0])
    z = state_h[-1][None] @ params["wout"] + params["bout"]
    return jax.nn.log_softmax(z, axis=-1)


# ---------------------- deterministic parameter init ----------------------

def linear_params(key, fan_in, fan_out):
    """Mimics nn.Linear default init: U(-1/sqrt(fan_in), 1/sqrt(fan_in))."""
    kw, kb = jax.random.split(key)
    bound = 1.0 / np.sqrt(fan_in)
    w = jax.random.uniform(kw, (fan_in, fan_out), jnp.float32, -bound, bound)
    b = jax.random.uniform(kb, (1, fan_out), jnp.float32, -bound, bound)
    return w, b


def init_params(key):
    keys = jax.random.split(key, 16)
    p = {}
    # conv module (two 1-D convs expressed as im2col matmuls)
    p["w5"], p["b5"] = linear_params(keys[0], CONV_KSIZES[0] * IN_CHANNEL * EMB_DIM, CONV_FILTERS[0])
    p["w3"], p["b3"] = linear_params(keys[1], CONV_KSIZES[1] * IN_CHANNEL * EMB_DIM, CONV_FILTERS[1])
    # leaf module (BinaryTreeLeafModule): cx / ox
    p["wcx"], p["bcx"] = linear_params(keys[2], IN_DIM, MEM_DIM)
    p["wox"], p["box"] = linear_params(keys[3], IN_DIM, MEM_DIM)
    # composer: 8 Linear(mem,mem) packed as [i | lf | rf | u] gates
    wls, wrs, bgs = [], [], []
    for gi in range(4):
        wl, bl = linear_params(keys[4 + 2 * gi], MEM_DIM, MEM_DIM)
        wr, br = linear_params(keys[5 + 2 * gi], MEM_DIM, MEM_DIM)
        wls.append(wl); wrs.append(wr); bgs.append(bl + br)
    p["wl"] = jnp.concatenate(wls, axis=1)        # (mem, 4*mem)
    p["wr"] = jnp.concatenate(wrs, axis=1)        # (mem, 4*mem)
    p["bg"] = jnp.concatenate(bgs, axis=1)        # (1,   4*mem)
    # sentiment module
    p["wout"], p["bout"] = linear_params(keys[12], MEM_DIM, NUM_CLASSES)
    return p


# ================================ main ================================
if __name__ == "__main__":
    key = jax.random.PRNGKey(0)
    kx, kp = jax.random.split(key)

    # token inputs: (seq_len, in_channel, emb_dim)
    x = jax.random.normal(kx, (SEQ_LEN, IN_CHANNEL, EMB_DIM), jnp.float32)
    params = init_params(kp)

    # balanced binary tree over 8 leaves: nodes 0..7 leaves, 8..14 internal (root = 14)
    left_ids  = [0, 2, 4, 6, 8, 10, 12]
    right_ids = [1, 3, 5, 7, 9, 11, 13]

    fwd = make_tree_forward(left_ids, right_ids, SEQ_LEN)
    output, loss = fwd(x, params)
    output = jax.block_until_ready(output)
    loss = jax.block_until_ready(loss)

    ref = reference_forward(x, left_ids, right_ids, params)
    np.testing.assert_allclose(np.asarray(output), np.asarray(ref),
                               rtol=2e-3, atol=2e-3)
    print("KERNEL_OK")
</pallas_src>

<mosaic_0001>
module attributes {stable_mosaic.version = 11 : i64} {
  func.func @fused_kernel(%arg0: memref<8x160xf32, #tpu.memory_space<vmem>>, %arg1: memref<160x100xf32, #tpu.memory_space<vmem>>, %arg2: memref<1x100xf32, #tpu.memory_space<vmem>>, %arg3: memref<8x96xf32, #tpu.memory_space<vmem>>, %arg4: memref<96x100xf32, #tpu.memory_space<vmem>>, %arg5: memref<1x100xf32, #tpu.memory_space<vmem>>, %arg6: memref<100x64xf32, #tpu.memory_space<vmem>>, %arg7: memref<100x64xf32, #tpu.memory_space<vmem>>, %arg8: memref<1x64xf32, #tpu.memory_space<vmem>>, %arg9: memref<64x128xf32, #tpu.memory_space<vmem>>, %arg10: memref<1x128xf32, #tpu.memory_space<vmem>>, %arg11: memref<32x3xf32, #tpu.memory_space<vmem>>, %arg12: memref<1x3xf32, #tpu.memory_space<vmem>>, %arg13: memref<1x3xf32, #tpu.memory_space<vmem>>) attributes {dimension_semantics = [], scalar_prefetch = 0 : i64, scratch_operands = 0 : i64, tpu.core_type = #tpu.core_type<tc>} {
    %c0 = arith.constant 0 : index
    %c0_0 = arith.constant 0 : index
    %0 = vector.load %arg0[%c0, %c0_0] : memref<8x160xf32, #tpu.memory_space<vmem>>, vector<8x160xf32>
    %c0_1 = arith.constant 0 : index
    %c0_2 = arith.constant 0 : index
    %1 = vector.load %arg1[%c0_1, %c0_2] : memref<160x100xf32, #tpu.memory_space<vmem>>, vector<160x100xf32>
    %cst = arith.constant dense<0.000000e+00> : vector<8x100xf32>
    %2 = tpu.matmul %0, %1, %cst {dimension_numbers = #tpu.dot_dimension_numbers<[1], [0], [0], [1], [0, 0, 1, 1], [], []>} : vector<8x160xf32>, vector<160x100xf32>, vector<8x100xf32> -> vector<8x100xf32>
    %c0_3 = arith.constant 0 : index
    %c0_4 = arith.constant 0 : index
    %3 = vector.load %arg2[%c0_3, %c0_4] : memref<1x100xf32, #tpu.memory_space<vmem>>, vector<1x100xf32>
    %4 = vector.broadcast %3 : vector<1x100xf32> to vector<8x100xf32>
    %5 = arith.addf %2, %4 : vector<8x100xf32>
    %cst_5 = arith.constant 0.000000e+00 : f32
    %6 = vector.broadcast %cst_5 : f32 to vector<8x100xf32>
    %7 = arith.maximumf %5, %6 : vector<8x100xf32>
    %c0_6 = arith.constant 0 : index
    %c0_7 = arith.constant 0 : index
    %8 = vector.load %arg3[%c0_6, %c0_7] : memref<8x96xf32, #tpu.memory_space<vmem>>, vector<8x96xf32>
    %c0_8 = arith.constant 0 : index
    %c0_9 = arith.constant 0 : index
    %9 = vector.load %arg4[%c0_8, %c0_9] : memref<96x100xf32, #tpu.memory_space<vmem>>, vector<96x100xf32>
    %cst_10 = arith.constant dense<0.000000e+00> : vector<8x100xf32>
    %10 = tpu.matmul %8, %9, %cst_10 {dimension_numbers = #tpu.dot_dimension_numbers<[1], [0], [0], [1], [0, 0, 1, 1], [], []>} : vector<8x96xf32>, vector<96x100xf32>, vector<8x100xf32> -> vector<8x100xf32>
    %c0_11 = arith.constant 0 : index
    %c0_12 = arith.constant 0 : index
    %11 = vector.load %arg5[%c0_11, %c0_12] : memref<1x100xf32, #tpu.memory_space<vmem>>, vector<1x100xf32>
    %12 = vector.broadcast %11 : vector<1x100xf32> to vector<8x100xf32>
    %13 = arith.addf %10, %12 : vector<8x100xf32>
    %cst_13 = arith.constant 0.000000e+00 : f32
    %14 = vector.broadcast %cst_13 : f32 to vector<8x100xf32>
    %15 = arith.maximumf %13, %14 : vector<8x100xf32>
    %c0_14 = arith.constant 0 : index
    %c0_15 = arith.constant 0 : index
    %16 = vector.load %arg6[%c0_14, %c0_15] : memref<100x64xf32, #tpu.memory_space<vmem>>, vector<100x64xf32>
    %cst_16 = arith.constant dense<0.000000e+00> : vector<8x64xf32>
    %17 = tpu.matmul %7, %16, %cst_16 {dimension_numbers = #tpu.dot_dimension_numbers<[1], [0], [0], [1], [0, 0, 1, 1], [], []>} : vector<8x100xf32>, vector<100x64xf32>, vector<8x64xf32> -> vector<8x64xf32>
    %c0_17 = arith.constant 0 : index
    %c0_18 = arith.constant 0 : index
    %18 = vector.load %arg7[%c0_17, %c0_18] : memref<100x64xf32, #tpu.memory_space<vmem>>, vector<100x64xf32>
    %cst_19 = arith.constant dense<0.000000e+00> : vector<8x64xf32>
    %19 = tpu.matmul %15, %18, %cst_19 {dimension_numbers = #tpu.dot_dimension_numbers<[1], [0], [0], [1], [0, 0, 1, 1], [], []>} : vector<8x100xf32>, vector<100x64xf32>, vector<8x64xf32> -> vector<8x64xf32>
    %20 = arith.addf %17, %19 : vector<8x64xf32>
    %c0_20 = arith.constant 0 : index
    %c0_21 = arith.constant 0 : index
    %21 = vector.load %arg8[%c0_20, %c0_21] : memref<1x64xf32, #tpu.memory_space<vmem>>, vector<1x64xf32>
    %22 = vector.broadcast %21 : vector<1x64xf32> to vector<8x64xf32>
    %23 = arith.addf %20, %22 : vector<8x64xf32>
    %24 = vector.extract_strided_slice %23 {offsets = [0, 0], sizes = [8, 32], strides = [1, 1]} : vector<8x64xf32> to vector<8x32xf32>
    %25 = vector.extract_strided_slice %23 {offsets = [0, 32], sizes = [8, 32], strides = [1, 1]} : vector<8x64xf32> to vector<8x32xf32>
    %26 = arith.negf %25 : vector<8x32xf32>
    %27 = math.exp %26 : vector<8x32xf32>
    %cst_22 = arith.constant 1.000000e+00 : f32
    %28 = vector.broadcast %cst_22 : f32 to vector<8x32xf32>
    %29 = arith.addf %28, %27 : vector<8x32xf32>
    %30 = arith.divf %28, %29 : vector<8x32xf32>
    %31 = math.tanh %24 : vector<8x32xf32>
    %32 = arith.mulf %30, %31 : vector<8x32xf32>
    %33 = vector.extract_strided_slice %24 {offsets = [0, 0], sizes = [1, 32], strides = [1, 1]} : vector<8x32xf32> to vector<1x32xf32>
    %34 = vector.extract_strided_slice %24 {offsets = [1, 0], sizes = [1, 32], strides = [1, 1]} : vector<8x32xf32> to vector<1x32xf32>
    %35 = vector.extract_strided_slice %24 {offsets = [2, 0], sizes = [1, 32], strides = [1, 1]} : vector<8x32xf32> to vector<1x32xf32>
    %36 = vector.extract_strided_slice %24 {offsets = [3, 0], sizes = [1, 32], strides = [1, 1]} : vector<8x32xf32> to vector<1x32xf32>
    %37 = vector.extract_strided_slice %24 {offsets = [4, 0], sizes = [1, 32], strides = [1, 1]} : vector<8x32xf32> to vector<1x32xf32>
    %38 = vector.extract_strided_slice %24 {offsets = [5, 0], sizes = [1, 32], strides = [1, 1]} : vector<8x32xf32> to vector<1x32xf32>
    %39 = vector.extract_strided_slice %24 {offsets = [6, 0], sizes = [1, 32], strides = [1, 1]} : vector<8x32xf32> to vector<1x32xf32>
    %40 = vector.extract_strided_slice %24 {offsets = [7, 0], sizes = [1, 32], strides = [1, 1]} : vector<8x32xf32> to vector<1x32xf32>
    %41 = vector.extract_strided_slice %32 {offsets = [0, 0], sizes = [1, 32], strides = [1, 1]} : vector<8x32xf32> to vector<1x32xf32>
    %42 = vector.extract_strided_slice %32 {offsets = [1, 0], sizes = [1, 32], strides = [1, 1]} : vector<8x32xf32> to vector<1x32xf32>
    %43 = vector.extract_strided_slice %32 {offsets = [2, 0], sizes = [1, 32], strides = [1, 1]} : vector<8x32xf32> to vector<1x32xf32>
    %44 = vector.extract_strided_slice %32 {offsets = [3, 0], sizes = [1, 32], strides = [1, 1]} : vector<8x32xf32> to vector<1x32xf32>
    %45 = vector.extract_strided_slice %32 {offsets = [4, 0], sizes = [1, 32], strides = [1, 1]} : vector<8x32xf32> to vector<1x32xf32>
    %46 = vector.extract_strided_slice %32 {offsets = [5, 0], sizes = [1, 32], strides = [1, 1]} : vector<8x32xf32> to vector<1x32xf32>
    %47 = vector.extract_strided_slice %32 {offsets = [6, 0], sizes = [1, 32], strides = [1, 1]} : vector<8x32xf32> to vector<1x32xf32>
    %48 = vector.extract_strided_slice %32 {offsets = [7, 0], sizes = [1, 32], strides = [1, 1]} : vector<8x32xf32> to vector<1x32xf32>
    %c0_23 = arith.constant 0 : index
    %c0_24 = arith.constant 0 : index
    %49 = vector.load %arg9[%c0_23, %c0_24] : memref<64x128xf32, #tpu.memory_space<vmem>>, vector<64x128xf32>
    %c0_25 = arith.constant 0 : index
    %c0_26 = arith.constant 0 : index
    %50 = vector.load %arg10[%c0_25, %c0_26] : memref<1x128xf32, #tpu.memory_space<vmem>>, vector<1x128xf32>
    %51 = tpu.concatenate %41, %43, %45, %47 in 0 : vector<1x32xf32>, vector<1x32xf32>, vector<1x32xf32>, vector<1x32xf32> -> vector<4x32xf32>
    %52 = tpu.concatenate %42, %44, %46, %48 in 0 : vector<1x32xf32>, vector<1x32xf32>, vector<1x32xf32>, vector<1x32xf32> -> vector<4x32xf32>
    %53 = tpu.concatenate %33, %35, %37, %39 in 0 : vector<1x32xf32>, vector<1x32xf32>, vector<1x32xf32>, vector<1x32xf32> -> vector<4x32xf32>
    %54 = tpu.concatenate %34, %36, %38, %40 in 0 : vector<1x32xf32>, vector<1x32xf32>, vector<1x32xf32>, vector<1x32xf32> -> vector<4x32xf32>
    %55 = tpu.concatenate %51, %52 in 1 : vector<4x32xf32>, vector<4x32xf32> -> vector<4x64xf32>
    %cst_27 = arith.constant dense<0.000000e+00> : vector<4x128xf32>
    %56 = tpu.matmul %55, %49, %cst_27 {dimension_numbers = #tpu.dot_dimension_numbers<[1], [0], [0], [1], [0, 0, 1, 1], [], []>} : vector<4x64xf32>, vector<64x128xf32>, vector<4x128xf32> -> vector<4x128xf32>
    %57 = vector.broadcast %50 : vector<1x128xf32> to vector<4x128xf32>
    %58 = arith.addf %56, %57 : vector<4x128xf32>
    %59 = vector.extract_strided_slice %58 {offsets = [0, 0], sizes = [4, 32], strides = [1, 1]} : vector<4x128xf32> to vector<4x32xf32>
    %60 = arith.negf %59 : vector<4x32xf32>
    %61 = math.exp %60 : vector<4x32xf32>
    %cst_28 = arith.constant 1.000000e+00 : f32
    %62 = vector.broadcast %cst_28 : f32 to vector<4x32xf32>
    %63 = arith.addf %62, %61 : vector<4x32xf32>
    %64 = arith.divf %62, %63 : vector<4x32xf32>
    %65 = vector.extract_strided_slice %58 {offsets = [0, 32], sizes = [4, 32], strides = [1, 1]} : vector<4x128xf32> to vector<4x32xf32>
    %66 = arith.negf %65 : vector<4x32xf32>
    %67 = math.exp %66 : vector<4x32xf32>
    %cst_29 = arith.constant 1.000000e+00 : f32
    %68 = vector.broadcast %cst_29 : f32 to vector<4x32xf32>
    %69 = arith.addf %68, %67 : vector<4x32xf32>
    %70 = arith.divf %68, %69 : vector<4x32xf32>
    %71 = vector.extract_strided_slice %58 {offsets = [0, 64], sizes = [4, 32], strides = [1, 1]} : vector<4x128xf32> to vector<4x32xf32>
    %72 = arith.negf %71 : vector<4x32xf32>
    %73 = math.exp %72 : vector<4x32xf32>
    %cst_30 = arith.constant 1.000000e+00 : f32
    %74 = vector.broadcast %cst_30 : f32 to vector<4x32xf32>
    %75 = arith.addf %74, %73 : vector<4x32xf32>
    %76 = arith.divf %74, %75 : vector<4x32xf32>
    %77 = vector.extract_strided_slice %58 {offsets = [0, 96], sizes = [4, 32], strides = [1, 1]} : vector<4x128xf32> to vector<4x32xf32>
    %78 = math.tanh %77 : vector<4x32xf32>
    %79 = arith.mulf %64, %78 : vector<4x32xf32>
    %80 = arith.mulf %70, %53 : vector<4x32xf32>
    %81 = arith.addf %79, %80 : vector<4x32xf32>
    %82 = arith.mulf %76, %54 : vector<4x32xf32>
    %83 = arith.addf %81, %82 : vector<4x32xf32>
    %84 = math.tanh %83 : vector<4x32xf32>
    %85 = vector.extract_strided_slice %83 {offsets = [0, 0], sizes = [1, 32], strides = [1, 1]} : vector<4x32xf32> to vector<1x32xf32>
    %86 = vector.extract_strided_slice %84 {offsets = [0, 0], sizes = [1, 32], strides = [1, 1]} : vector<4x32xf32> to vector<1x32xf32>
    %87 = vector.extract_strided_slice %83 {offsets = [1, 0], sizes = [1, 32], strides = [1, 1]} : vector<4x32xf32> to vector<1x32xf32>
    %88 = vector.extract_strided_slice %84 {offsets = [1, 0], sizes = [1, 32], strides = [1, 1]} : vector<4x32xf32> to vector<1x32xf32>
    %89 = vector.extract_strided_slice %83 {offsets = [2, 0], sizes = [1, 32], strides = [1, 1]} : vector<4x32xf32> to vector<1x32xf32>
    %90 = vector.extract_strided_slice %84 {offsets = [2, 0], sizes = [1, 32], strides = [1, 1]} : vector<4x32xf32> to vector<1x32xf32>
    %91 = vector.extract_strided_slice %83 {offsets = [3, 0], sizes = [1, 32], strides = [1, 1]} : vector<4x32xf32> to vector<1x32xf32>
    %92 = vector.extract_strided_slice %84 {offsets = [3, 0], sizes = [1, 32], strides = [1, 1]} : vector<4x32xf32> to vector<1x32xf32>
    %93 = tpu.concatenate %86, %90 in 0 : vector<1x32xf32>, vector<1x32xf32> -> vector<2x32xf32>
    %94 = tpu.concatenate %88, %92 in 0 : vector<1x32xf32>, vector<1x32xf32> -> vector<2x32xf32>
    %95 = tpu.concatenate %85, %89 in 0 : vector<1x32xf32>, vector<1x32xf32> -> vector<2x32xf32>
    %96 = tpu.concatenate %87, %91 in 0 : vector<1x32xf32>, vector<1x32xf32> -> vector<2x32xf32>
    %97 = tpu.concatenate %93, %94 in 1 : vector<2x32xf32>, vector<2x32xf32> -> vector<2x64xf32>
    %cst_31 = arith.constant dense<0.000000e+00> : vector<2x128xf32>
    %98 = tpu.matmul %97, %49, %cst_31 {dimension_numbers = #tpu.dot_dimension_numbers<[1], [0], [0], [1], [0, 0, 1, 1], [], []>} : vector<2x64xf32>, vector<64x128xf32>, vector<2x128xf32> -> vector<2x128xf32>
    %99 = vector.broadcast %50 : vector<1x128xf32> to vector<2x128xf32>
    %100 = arith.addf %98, %99 : vector<2x128xf32>
    %101 = vector.extract_strided_slice %100 {offsets = [0, 0], sizes = [2, 32], strides = [1, 1]} : vector<2x128xf32> to vector<2x32xf32>
    %102 = arith.negf %101 : vector<2x32xf32>
    %103 = math.exp %102 : vector<2x32xf32>
    %cst_32 = arith.constant 1.000000e+00 : f32
    %104 = vector.broadcast %cst_32 : f32 to vector<2x32xf32>
    %105 = arith.addf %104, %103 : vector<2x32xf32>
    %106 = arith.divf %104, %105 : vector<2x32xf32>
    %107 = vector.extract_strided_slice %100 {offsets = [0, 32], sizes = [2, 32], strides = [1, 1]} : vector<2x128xf32> to vector<2x32xf32>
    %108 = arith.negf %107 : vector<2x32xf32>
    %109 = math.exp %108 : vector<2x32xf32>
    %cst_33 = arith.constant 1.000000e+00 : f32
    %110 = vector.broadcast %cst_33 : f32 to vector<2x32xf32>
    %111 = arith.addf %110, %109 : vector<2x32xf32>
    %112 = arith.divf %110, %111 : vector<2x32xf32>
    %113 = vector.extract_strided_slice %100 {offsets = [0, 64], sizes = [2, 32], strides = [1, 1]} : vector<2x128xf32> to vector<2x32xf32>
    %114 = arith.negf %113 : vector<2x32xf32>
    %115 = math.exp %114 : vector<2x32xf32>
    %cst_34 = arith.constant 1.000000e+00 : f32
    %116 = vector.broadcast %cst_34 : f32 to vector<2x32xf32>
    %117 = arith.addf %116, %115 : vector<2x32xf32>
    %118 = arith.divf %116, %117 : vector<2x32xf32>
    %119 = vector.extract_strided_slice %100 {offsets = [0, 96], sizes = [2, 32], strides = [1, 1]} : vector<2x128xf32> to vector<2x32xf32>
    %120 = math.tanh %119 : vector<2x32xf32>
    %121 = arith.mulf %106, %120 : vector<2x32xf32>
    %122 = arith.mulf %112, %95 : vector<2x32xf32>
    %123 = arith.addf %121, %122 : vector<2x32xf32>
    %124 = arith.mulf %118, %96 : vector<2x32xf32>
    %125 = arith.addf %123, %124 : vector<2x32xf32>
    %126 = math.tanh %125 : vector<2x32xf32>
    %127 = vector.extract_strided_slice %125 {offsets = [0, 0], sizes = [1, 32], strides = [1, 1]} : vector<2x32xf32> to vector<1x32xf32>
    %128 = vector.extract_strided_slice %126 {offsets = [0, 0], sizes = [1, 32], strides = [1, 1]} : vector<2x32xf32> to vector<1x32xf32>
    %129 = vector.extract_strided_slice %125 {offsets = [1, 0], sizes = [1, 32], strides = [1, 1]} : vector<2x32xf32> to vector<1x32xf32>
    %130 = vector.extract_strided_slice %126 {offsets = [1, 0], sizes = [1, 32], strides = [1, 1]} : vector<2x32xf32> to vector<1x32xf32>
    %131 = tpu.concatenate %128, %130 in 1 : vector<1x32xf32>, vector<1x32xf32> -> vector<1x64xf32>
    %cst_35 = arith.constant dense<0.000000e+00> : vector<1x128xf32>
    %132 = tpu.matmul %131, %49, %cst_35 {dimension_numbers = #tpu.dot_dimension_numbers<[1], [0], [0], [1], [0, 0, 1, 1], [], []>} : vector<1x64xf32>, vector<64x128xf32>, vector<1x128xf32> -> vector<1x128xf32>
    %133 = arith.addf %132, %50 : vector<1x128xf32>
    %134 = vector.extract_strided_slice %133 {offsets = [0, 0], sizes = [1, 32], strides = [1, 1]} : vector<1x128xf32> to vector<1x32xf32>
    %135 = arith.negf %134 : vector<1x32xf32>
    %136 = math.exp %135 : vector<1x32xf32>
    %cst_36 = arith.constant 1.000000e+00 : f32
    %137 = vector.broadcast %cst_36 : f32 to vector<1x32xf32>
    %138 = arith.addf %137, %136 : vector<1x32xf32>
    %139 = arith.divf %137, %138 : vector<1x32xf32>
    %140 = vector.extract_strided_slice %133 {offsets = [0, 32], sizes = [1, 32], strides = [1, 1]} : vector<1x128xf32> to vector<1x32xf32>
    %141 = arith.negf %140 : vector<1x32xf32>
    %142 = math.exp %141 : vector<1x32xf32>
    %cst_37 = arith.constant 1.000000e+00 : f32
    %143 = vector.broadcast %cst_37 : f32 to vector<1x32xf32>
    %144 = arith.addf %143, %142 : vector<1x32xf32>
    %145 = arith.divf %143, %144 : vector<1x32xf32>
    %146 = vector.extract_strided_slice %133 {offsets = [0, 64], sizes = [1, 32], strides = [1, 1]} : vector<1x128xf32> to vector<1x32xf32>
    %147 = arith.negf %146 : vector<1x32xf32>
    %148 = math.exp %147 : vector<1x32xf32>
    %cst_38 = arith.constant 1.000000e+00 : f32
    %149 = vector.broadcast %cst_38 : f32 to vector<1x32xf32>
    %150 = arith.addf %149, %148 : vector<1x32xf32>
    %151 = arith.divf %149, %150 : vector<1x32xf32>
    %152 = vector.extract_strided_slice %133 {offsets = [0, 96], sizes = [1, 32], strides = [1, 1]} : vector<1x128xf32> to vector<1x32xf32>
    %153 = math.tanh %152 : vector<1x32xf32>
    %154 = arith.mulf %139, %153 : vector<1x32xf32>
    %155 = arith.mulf %145, %127 : vector<1x32xf32>
    %156 = arith.addf %154, %155 : vector<1x32xf32>
    %157 = arith.mulf %151, %129 : vector<1x32xf32>
    %158 = arith.addf %156, %157 : vector<1x32xf32>
    %159 = math.tanh %158 : vector<1x32xf32>
    %c0_39 = arith.constant 0 : index
    %c0_40 = arith.constant 0 : index
    %160 = vector.load %arg11[%c0_39, %c0_40] : memref<32x3xf32, #tpu.memory_space<vmem>>, vector<32x3xf32>
    %cst_41 = arith.constant dense<0.000000e+00> : vector<1x3xf32>
    %161 = tpu.matmul %159, %160, %cst_41 {dimension_numbers = #tpu.dot_dimension_numbers<[1], [0], [0], [1], [0, 0, 1, 1], [], []>} : vector<1x32xf32>, vector<32x3xf32>, vector<1x3xf32> -> vector<1x3xf32>
    %c0_42 = arith.constant 0 : index
    %c0_43 = arith.constant 0 : index
    %162 = vector.load %arg12[%c0_42, %c0_43] : memref<1x3xf32, #tpu.memory_space<vmem>>, vector<1x3xf32>
    %163 = arith.addf %161, %162 : vector<1x3xf32>
    %cst_44 = arith.constant dense<0xFF800000> : vector<1xf32>
    %164 = vector.multi_reduction <maximumf>, %163, %cst_44 [1] : vector<1x3xf32> to vector<1xf32>
    %165 = vector.shape_cast %164 : vector<1xf32> to vector<1x1xf32>
    %166 = vector.broadcast %165 : vector<1x1xf32> to vector<1x3xf32>
    %167 = arith.subf %163, %166 : vector<1x3xf32>
    %168 = math.exp %167 : vector<1x3xf32>
    %cst_45 = arith.constant dense<0.000000e+00> : vector<1xf32>
    %169 = vector.multi_reduction <add>, %168, %cst_45 [1] : vector<1x3xf32> to vector<1xf32>
    %170 = vector.shape_cast %169 : vector<1xf32> to vector<1x1xf32>
    %171 = math.log %170 : vector<1x1xf32>
    %172 = arith.addf %171, %165 : vector<1x1xf32>
    %173 = vector.broadcast %172 : vector<1x1xf32> to vector<1x3xf32>
    %174 = arith.subf %163, %173 : vector<1x3xf32>
    %c0_46 = arith.constant 0 : index
    %c0_47 = arith.constant 0 : index
    %175 = vector.load %arg13[%c0_46, %c0_47] : memref<1x3xf32, #tpu.memory_space<vmem>>, vector<1x3xf32>
    tpu.vector_store %arg13[%c0_46, %c0_47], %174 {strides = array<i32>} : memref<1x3xf32, #tpu.memory_space<vmem>>, vector<1x3xf32>,
    return
  }
}

</mosaic_0001>

<bundles_post_ra>
// kernel: forward.1
= control target key start
LH: loop header
LB: loop body
LE: loop exit
PB: predicated region body
PF: predicated region fallthrough
CT: control target
= control target key end

     0   :  { %v1382_v3 = vmov 0.0|0.0   ;;  %vm1383_vm0 = vmmov 0   ;;  %v1384_v7 = vmov 0.0   ;;  %vm74_vm1 = vcmask 261120   ;;  %s1813_s0 = inlined_call_operand.vmem [shape: f32[8,160], index: 0, kind: input, shape index: {}]   ;;  %s1814_s1 = inlined_call_operand.vmem [shape: f32[160,100], index: 1, kind: input, shape index: {}]   ;;  %s1815_s2 = inlined_call_operand.vmem [shape: f32[1,100], index: 2, kind: input, shape index: {}]   ;;  %s1816_s3 = inlined_call_operand.vmem [shape: f32[8,96], index: 3, kind: input, shape index: {}]   ;;  %s1817_s4 = inlined_call_operand.vmem [shape: f32[96,100], index: 4, kind: input, shape index: {}]   ;;  %s1818_s5 = inlined_call_operand.vmem [shape: f32[1,100], index: 5, kind: input, shape index: {}]   ;;  %s1819_s6 = inlined_call_operand.vmem [shape: f32[100,64], index: 6, kind: input, shape index: {}]   ;;  %s1820_s7 = inlined_call_operand.vmem [shape: f32[100,64], index: 7, kind: input, shape index: {}]   ;;  %s1821_s8 = inlined_call_operand.vmem [shape: f32[1,64], index: 8, kind: input, shape index: {}]   ;;  %s1822_s9 = inlined_call_operand.vmem [shape: f32[64,128], index: 9, kind: input, shape index: {}]   ;;  %s1823_s10 = inlined_call_operand.vmem [shape: f32[1,128], index: 10, kind: input, shape index: {}]   ;;  %s1824_s11 = inlined_call_operand.vmem [shape: f32[32,3], index: 11, kind: input, shape index: {}]   ;;  %s1825_s12 = inlined_call_operand.vmem [shape: f32[1,3], index: 12, kind: input, shape index: {}]   ;;  %s1826_s13 = inlined_call_operand.hbm [shape: f32[1,3], index: 13, kind: output, shape index: {}]  }
   0x1   :  { %v47_v0 = vld [vmem:[%s1814_s1] sm:$0xff]  ;;  %v48_v1 = vld [vmem:[%s1814_s1 + $0x8] sm:$0xff]  ;;  %v49_v2 = vld [vmem:[%s1814_s1 + $0x10] sm:$0xff]  ;;  %1191 = vmatprep.subr.bf16.mxu0 %v1382_v3  ;;  %1221 = vmatprep.subr.bf16.mxu1 %v1382_v3 }
   0x2   :  { %v1192_v4 = vpack.c.bf16 %v48_v1, %v47_v0  ;;  %v50_v5 = vld [vmem:[%s1814_s1 + $0x18] sm:$0xff]  ;;  %v150_v6 = vld [vmem:[%s1817_s4] sm:$0xff]  ;;  %1062 = vmatprep.mubr.msk.f32.mxu1 %vm1383_vm0, %v1384_v7  ;;  %v151_v10 = vld [vmem:[%s1817_s4 + $0x8] sm:$0xff] }
   0x3   :  { %v1195_v8 = vpack.c.bf16 %v50_v5, %v49_v2  ;;  %v51_v9 = vld [vmem:[%s1814_s1 + $0x20] sm:$0xff]  ;;  %v52_v11 = vld [vmem:[%s1814_s1 + $0x28] sm:$0xff]  ;;  %v1222_v12 = vpack.c.bf16 %v151_v10, %v150_v6  ;;  %v152_v13 = vld [vmem:[%s1817_s4 + $0x10] sm:$0xff] }
   0x4   :  { %1193 = vmatpush1.bf16.msra.mxu0 %v1192_v4  ;;  %v153_v14 = vld [vmem:[%s1817_s4 + $0x18] sm:$0xff]  ;;  %v1198_v16 = vpack.c.bf16 %v52_v11, %v51_v9  ;;  %v154_v17 = vld [vmem:[%s1817_s4 + $0x20] sm:$0xff]  ;;  %v155_v18 = vld [vmem:[%s1817_s4 + $0x28] sm:$0xff] }
   0x5   :  { %1194 = vmatprep.subr.bf16.mxu0 %v1382_v3  ;;  %1223 = vmatpush3.bf16.msra.mxu1 %v1222_v12  ;;  %v1225_v15 = vpack.c.bf16 %v153_v14, %v152_v13  ;;  %v53_v19 = vld [vmem:[%s1814_s1 + $0x30] sm:$0xff]  ;;  %v54_v20 = vld [vmem:[%s1814_s1 + $0x38] sm:$0xff]  ;;  %v1228_v21 = vpack.c.bf16 %v155_v18, %v154_v17  ;;  %v46_v22 = vld [vmem:[%s1813_s0 + $0x8] sm:$0xff] }
   0x6   :  { %1224 = vmatprep.subr.bf16.mxu1 %v1382_v3  ;;  %v1201_v23 = vpack.c.bf16 %v54_v20, %v53_v19  ;;  %v156_v24 = vld [vmem:[%s1817_s4 + $0x30] sm:$0xff]  ;;  %v157_v25 = vld [vmem:[%s1817_s4 + $0x38] sm:$0xff]  ;;  %v55_v26 = vld [vmem:[%s1814_s1 + $0x40] sm:$0xff]  ;;  %949 = vmatprep.mubr.msk.f32.mxu0 %vm74_vm1, %v46_v22 }
   0x7   :  { %v56_v27 = vld [vmem:[%s1814_s1 + $0x48] sm:$0xff]  ;;  %v1231_v28 = vpack.c.bf16 %v157_v25, %v156_v24  ;;  %v158_v30 = vld [vmem:[%s1817_s4 + $0x40] sm:$0xff]  ;;  %v57_v32 = vld [vmem:[%s1814_s1 + $0x50] sm:$0xff] }
   0x8   :  { %1196 = vmatpush1.bf16.msra.mxu0 %v1195_v8  ;;  %v1204_v29 = vpack.c.bf16 %v56_v27, %v55_v26  ;;  %v159_v31 = vld [vmem:[%s1817_s4 + $0x48] sm:$0xff]  ;;  %v58_v33 = vld [vmem:[%s1814_s1 + $0x58] sm:$0xff] }
   0x9   :  { %1197 = vmatprep.subr.bf16.mxu0 %v1382_v3  ;;  %1226 = vmatpush3.bf16.msra.mxu1 %v1225_v15  ;;  %v1234_v34 = vpack.c.bf16 %v159_v31, %v158_v30 }
   0xa   :  { %1227 = vmatprep.subr.bf16.mxu1 %v1382_v3 }
   0xc   :  { %1199 = vmatpush1.bf16.msra.mxu0 %v1198_v16 }
   0xd   :  { %1200 = vmatprep.subr.bf16.mxu0 %v1382_v3  ;;  %1229 = vmatpush3.bf16.msra.mxu1 %v1228_v21 }
   0xe   :  { %1230 = vmatprep.subr.bf16.mxu1 %v1382_v3 }
  0x10   :  { %1202 = vmatpush1.bf16.msra.mxu0 %v1201_v23 }
  0x11   :  { %1203 = vmatprep.subr.bf16.mxu0 %v1382_v3  ;;  %1232 = vmatpush3.bf16.msra.mxu1 %v1231_v28 }
  0x12   :  { %18 = vsyncpa [#allocation3], 0  ;;  %v1207_v35 = vpack.c.bf16 %v58_v33, %v57_v32  ;;  %1233 = vmatprep.subr.bf16.mxu1 %v1382_v3  ;;  %v160_v36 = vld [vmem:[%s1817_s4 + $0x50] sm:$0xff]  ;;  %v161_v37 = vld [vmem:[%s1817_s4 + $0x58] sm:$0xff]  ;;  %vm169_vm2 = vcmask 785408   ;;  %vm274_vm3 = vcmask 1043456  }
  0x13   :  { %v59_v38 = vld [vmem:[%s1814_s1 + $0x60] sm:$0xff]  ;;  %v60_v39 = vld [vmem:[%s1814_s1 + $0x68] sm:$0xff]  ;;  %v1237_v40 = vpack.c.bf16 %v161_v37, %v160_v36  ;;  %v61_v44 = vld [vmem:[%s1814_s1 + $0x70] sm:$0xff]  ;;  %vm270_vm4 = vcmask 818176   ;;  %vm460_vm5 = vcmask 1040384   ;;  %vm462_vm6 = vcmask 1041408  }
  0x14   :  { %1205 = vmatpush1.bf16.msra.mxu0 %v1204_v29  ;;  %v1210_v41 = vpack.c.bf16 %v60_v39, %v59_v38  ;;  %v257_v42 = vld [vmem:[%s1820_s7] sm:$0xff]  ;;  %v258_v43 = vld [vmem:[%s1820_s7 + $0x8] sm:$0xff]  ;;  %v62_v45 = vld [vmem:[%s1814_s1 + $0x78] sm:$0xff]  ;;  %vm464_vm7 = vcmask 1042432   ;;  %vm497_vm8 = vcmask 523264   ;;  %vm919_vm9 = vcmask 16384  }
  0x15   :  { %1206 = vmatprep.subr.bf16.mxu0 %v1382_v3  ;;  %1235 = vmatpush3.bf16.msra.mxu1 %v1234_v34  ;;  %v149_v46 = vld [vmem:[%s1816_s3] sm:$0xff]  ;;  %v1240_v47 = vpack.c.bf16 %v258_v43, %v257_v42  ;;  %v1213_v48 = vpack.c.bf16 %v62_v45, %v61_v44  ;;  %v259_v49 = vld [vmem:[%s1820_s7 + $0x10] sm:$0xff]  ;;  %v260_v50 = vld [vmem:[%s1820_s7 + $0x18] sm:$0xff]  ;;  %s1386_s3 = smov 64  }
  0x16   :  { %1236 = vmatprep.subr.bf16.mxu1 %v1382_v3  ;;  %v63_v51 = vld [vmem:[%s1814_s1 + $0x80] sm:$0xff]  ;;  %v64_v52 = vld [vmem:[%s1814_s1 + $0x88] sm:$0xff]  ;;  %v1243_v53 = vpack.c.bf16 %v260_v50, %v259_v49  ;;  %v65_v57 = vld [vmem:[%s1814_s1 + $0x90] sm:$0xff] }
  0x17   :  { %v1216_v54 = vpack.c.bf16 %v64_v52, %v63_v51  ;;  %v261_v55 = vld [vmem:[%s1820_s7 + $0x20] sm:$0xff]  ;;  %v262_v56 = vld [vmem:[%s1820_s7 + $0x28] sm:$0xff]  ;;  %v66_v58 = vld [vmem:[%s1814_s1 + $0x98] sm:$0xff] }
  0x18   :  { %1208 = vmatpush1.bf16.msra.mxu0 %v1207_v35  ;;  %v1246_v59 = vpack.c.bf16 %v262_v56, %v261_v55  ;;  %v1219_v60 = vpack.c.bf16 %v66_v58, %v65_v57  ;;  %v263_v61 = vld [vmem:[%s1820_s7 + $0x30] sm:$0xff]  ;;  %v264_v62 = vld [vmem:[%s1820_s7 + $0x38] sm:$0xff]  ;;  %v244_v63 = vld [vmem:[%s1819_s6] sm:$0xff] }
  0x19   :  { %1209 = vmatprep.subr.bf16.mxu0 %v1382_v3  ;;  %1238 = vmatpush3.bf16.msra.mxu1 %v1237_v40  ;;  %v245_v0 = vld [vmem:[%s1819_s6 + $0x8] sm:$0xff]  ;;  %v1249_v1 = vpack.c.bf16 %v264_v62, %v263_v61  ;;  %v45_v2 = vld [vmem:[%s1813_s0] sm:$0xff]  ;;  %v246_v8 = vld [vmem:[%s1819_s6 + $0x10] sm:$0xff] }
  0x1a   :  { %1239 = vmatprep.subr.bf16.mxu1 %v1382_v3  ;;  %v1258_v4 = vpack.c.bf16 %v245_v0, %v244_v63  ;;  %v265_v5 = vld [vmem:[%s1820_s7 + $0x40] sm:$0xff]  ;;  %v266_v6 = vld [vmem:[%s1820_s7 + $0x48] sm:$0xff]  ;;  %v247_v9 = vld [vmem:[%s1819_s6 + $0x18] sm:$0xff] }
  0x1b   :  { %v1252_v10 = vpack.c.bf16 %v266_v6, %v265_v5  ;;  %v1261_v11 = vpack.c.bf16 %v247_v9, %v246_v8  ;;  %v248_v12 = vld [vmem:[%s1819_s6 + $0x20] sm:$0xff]  ;;  %v249_v13 = vld [vmem:[%s1819_s6 + $0x28] sm:$0xff]  ;;  %v250_v15 = vld [vmem:[%s1819_s6 + $0x30] sm:$0xff] }
  0x1c   :  { %1211 = vmatpush1.bf16.msra.mxu0 %v1210_v41  ;;  %1063 = vmatmul.mubr.msk.f32.vlgmr.msra.gmra.mrb[0].mxu1 %vm169_vm2, %v149_v46  ;;  %v1264_v14 = vpack.c.bf16 %v249_v13, %v248_v12  ;;  %v251_v16 = vld [vmem:[%s1819_s6 + $0x38] sm:$0xff]  ;;  %v252_v18 = vld [vmem:[%s1819_s6 + $0x40] sm:$0xff]  ;;  %v253_v19 = vld [vmem:[%s1819_s6 + $0x48] sm:$0xff] }
  0x1d   :  { %1212 = vmatprep.subr.bf16.mxu0 %v1382_v3  ;;  %1241 = vmatpush3.bf16.msra.mxu1 %v1240_v47  ;;  %v1267_v17 = vpack.c.bf16 %v251_v16, %v250_v15  ;;  %v1270_v20 = vpack.c.bf16 %v253_v19, %v252_v18  ;;  %v267_v21 = vld [vmem:[%s1820_s7 + $0x50] sm:$0xff]  ;;  %v268_v22 = vld [vmem:[%s1820_s7 + $0x58] sm:$0xff]  ;;  %v269_v27 = vld [vmem:[%s1820_s7 + $0x60] sm:$0xf] }
  0x1e   :  { %1091 = vmatprep.mubr.msk.f32.mxu1 %vm1383_vm0, %v1384_v7  ;;  %1242 = vmatprep.subr.bf16.mxu1 %v1382_v3  ;;  %v1255_v23 = vpack.c.bf16 %v268_v22, %v267_v21  ;;  %v254_v24 = vld [vmem:[%s1819_s6 + $0x50] sm:$0xff]  ;;  %v255_v25 = vld [vmem:[%s1819_s6 + $0x58] sm:$0xff]  ;;  %v256_v28 = vld [vmem:[%s1819_s6 + $0x60] sm:$0xf] }
  0x1f   :  { %v1273_v26 = vpack.c.bf16 %v255_v25, %v254_v24  ;;  %v950_v29 = vld [vmem:[%s1818_s5] ss:$0 sm:$0xff]  ;;  %v445_v56 = vld [vmem:[%s1822_s9 + $0x8] sm:$0xff]  ;;  %v446_v57 = vld [vmem:[%s1822_s9 + $0x10] sm:$0xff]  ;;  %v492_v25 = vlaneseq }
  0x20   :  { %1214 = vmatpush1.bf16.msra.mxu0 %v1213_v48  ;;  %v948_v34 = vld [vmem:[%s1815_s2] ss:$0 sm:$0xff]  ;;  %s1385_s2 = smov 32   ;;  %v449_v63 = vld [vmem:[%s1822_s9 + $0x28] sm:$0xff] }
  0x21   :  { %1215 = vmatprep.subr.bf16.mxu0 %v1382_v3  ;;  %1244 = vmatpush3.bf16.msra.mxu1 %v1243_v53  ;;  %v956_v42 = vld [vmem:[%s1821_s8] ss:$0 sm:$0xff] }
  0x22   :  { %1245 = vmatprep.subr.bf16.mxu1 %v1382_v3  ;;  %v444_v55 = vld [vmem:[%s1822_s9] sm:$0xff] }
  0x23   :  { %v1276_v58 = vpack.c.bf16 %v445_v56, %v444_v55  ;;  %v448_v62 = vld [vmem:[%s1822_s9 + $0x20] sm:$0xff] }
  0x24   :  { %1217 = vmatpush1.bf16.msra.mxu0 %v1216_v54 }
  0x25   :  { %1218 = vmatprep.subr.bf16.mxu0 %v1382_v3  ;;  %1247 = vmatpush3.bf16.msra.mxu1 %v1246_v59  ;;  %v447_v59 = vld [vmem:[%s1822_s9 + $0x18] sm:$0xff] }
  0x26   :  { %1248 = vmatprep.subr.bf16.mxu1 %v1382_v3  ;;  %v1279_v61 = vpack.c.bf16 %v447_v59, %v446_v57 }
  0x28   :  { %1220 = vmatpush1.bf16.msra.mxu0 %v1219_v60 }
  0x29   :  { %1257 = vmatprep.subr.bf16.mxu0 %v1382_v3  ;;  %1250 = vmatpush3.bf16.msra.mxu1 %v1249_v1  ;;  %v1282_v1 = vpack.c.bf16 %v449_v63, %v448_v62 }
  0x2a   :  { %1251 = vmatprep.subr.bf16.mxu1 %v1382_v3 }
  0x2b   :  { %143 = vmatmul.mubr.f32.vlgmr.msra.gmra.mrb[0].mxu0 %v45_v2  ;;  %v450_v2 = vld [vmem:[%s1822_s9 + $0x30] sm:$0xff] }
  0x2c   :  { %1259 = vmatpush3.bf16.msra.mxu0 %v1258_v4  ;;  %1120 = vmatprep.mubr.msk.f32.mxu0 %vm1383_vm0, %v1384_v7  ;;  %v451_v4 = vld [vmem:[%s1822_s9 + $0x38] sm:$0xff]  ;;  %s1387_s9 = smov 96  }
  0x2d   :  { %1260 = vmatprep.subr.bf16.mxu0 %v1382_v3  ;;  %1253 = vmatpush3.bf16.msra.mxu1 %v1252_v10  ;;  %v1285_v5 = vpack.c.bf16 %v451_v4, %v450_v2 }
  0x2e   :  { %1254 = vmatprep.subr.bf16.mxu1 %v1382_v3 }
  0x30   :  { %1262 = vmatpush3.bf16.msra.mxu0 %v1261_v11 }
  0x31   :  { %1263 = vmatprep.subr.bf16.mxu0 %v1382_v3  ;;  %1256 = vmatpush3.bf16.msra.mxu1 %v1255_v23 }
  0x32   :  { %1089 = vmatprep.subr.mxu1 %v1384_v7 }
  0x34   :  { %1265 = vmatpush3.bf16.msra.mxu0 %v1264_v14 }
  0x35   :  { %1266 = vmatprep.subr.bf16.mxu0 %v1382_v3  ;;  %1090 = vmatpush3.msk.msra.mxu1 %vm274_vm3, %v269_v27 }
  0x36   :  { %1275 = vmatprep.subr.bf16.mxu1 %v1382_v3 }
  0x38   :  { %1268 = vmatpush3.bf16.msra.mxu0 %v1267_v17 }
  0x39   :  { %1269 = vmatprep.subr.bf16.mxu0 %v1382_v3 }
  0x3c   :  { %1271 = vmatpush3.bf16.msra.mxu0 %v1270_v20 }
  0x3d   :  { %1272 = vmatprep.subr.bf16.mxu0 %v1382_v3 }
  0x40   :  { %1274 = vmatpush3.bf16.msra.mxu0 %v1273_v26  ;;  %v493_v26 = vshrl.u32 %v492_v25, 7 }
  0x41   :  { %1118 = vmatprep.subr.mxu0 %v1384_v7 }
  0x42   :  { %v494_v27 = vsub.s32 0, %v493_v26  ;;  %v841_v26 = vld [vmem:[%s1824_s11] sm:$0xff] }
  0x44   :  { %1119 = vmatpush3.msk.msra.mxu0 %vm274_vm3, %v256_v28  ;;  %v1752_v28 = vld [vmem:[%s1823_s10] sm:$0x1] }
  0x45   :  { %1287 = vmatprep.subr.bf16.mxu0 %v1382_v3 }
  0xef   :  { %v239_v30 = vpop.f32.mrb[0].mxu1 }
  0xf0   :  { %v240_v31 = vadd.f32 %v950_v29, %v239_v30  ;;  %v1064_v32 = vpop.f32.mrb[1].mxu1  ;;  %v495_v29 = vrot.slane %v1752_v28, %v494_v27  ;;  %v842_v27 = vld [vmem:[%s1824_s11 + $0x8] sm:$0xff] }
  0xf2   :  { %v243_v33 = vmax.f32 %v240_v31, 0.0 }
  0xf4   :  { %1092 = vmatmul.mubr.msk.f32.vlgmr.msra.gmra.mrb[2].mxu1 %vm270_vm4, %v243_v33 }
  0xf5   :  { %1139 = vmatprep.mubr.msk.f32.mxu1 %vm1383_vm0, %v1384_v7  ;;  %1277 = vmatpush3.bf16.msra.mxu1 %v1276_v58 }
  0xf6   :  { %1278 = vmatprep.subr.bf16.mxu1 %v1382_v3 }
  0xf9   :  { %1280 = vmatpush3.bf16.msra.mxu1 %v1279_v61 }
  0xfa   :  { %1281 = vmatprep.subr.bf16.mxu1 %v1382_v3 }
  0xfd   :  { %1283 = vmatpush3.bf16.msra.mxu1 %v1282_v1 }
  0xfe   :  { %v144_v35 = vpop.f32.mrb[0].mxu0  ;;  %1284 = vmatprep.subr.bf16.mxu1 %v1382_v3 }
  0xff   :  { %v145_v36 = vadd.f32 %v948_v34, %v144_v35  ;;  %v146_v37 = vpop.f32.mrb[1].mxu0 }
 0x101   :  { %v148_v38 = vmax.f32 %v145_v36, 0.0  ;;  %1286 = vmatpush3.bf16.msra.mxu1 %v1285_v5 }
 0x102   :  { %1299 = vmatprep.subr.bf16.mxu1 %v1382_v3 }
 0x103   :  { %1121 = vmatmul.mubr.msk.f32.vlgmr.msra.gmra.mrb[2].mxu0 %vm270_vm4, %v148_v38 }
 0x104   :  { %1158 = vmatprep.mubr.msk.f32.mxu0 %vm1383_vm0, %v1384_v7  ;;  %1289 = vmatpush3.bf16.msra.mxu0 %v1276_v58 }
 0x105   :  { %1290 = vmatprep.subr.bf16.mxu0 %v1382_v3 }
 0x108   :  { %1292 = vmatpush3.bf16.msra.mxu0 %v1279_v61 }
 0x109   :  { %1293 = vmatprep.subr.bf16.mxu0 %v1382_v3 }
 0x10c   :  { %1295 = vmatpush3.bf16.msra.mxu0 %v1282_v1 }
 0x10d   :  { %1296 = vmatprep.subr.bf16.mxu0 %v1382_v3 }
 0x110   :  { %1298 = vmatpush3.bf16.msra.mxu0 %v1285_v5 }
 0x111   :  { %1311 = vmatprep.subr.bf16.mxu0 %v1382_v3 }
 0x1c7   :  { %v344_v39 = vpop.f32.mrb[2].mxu1 }
 0x1c8   :  { %v1093_v40 = vpop.f32.mrb[3].mxu1 }
 0x1d6   :  { %v420_v41 = vpop.f32.mrb[2].mxu0 }
 0x1d7   :  { %v421_v43 = vadd.f32 %v420_v41, %v344_v39  ;;  %v1122_v44 = vpop.f32.mrb[3].mxu0 }
 0x1d9   :  { %v431_v45 = vadd.f32 %v956_v42, %v421_v43 }
 0x1db   :  { %v472_v46 = vrot.slane %v431_v45, 1  ;;  %v474_v47 = vrot.slane %v431_v45, 2  ;;  %v476_v48 = vrot.slane %v431_v45, 3  ;;  %1324 = vtanh.f32 %v431_v45 }
 0x1dc   :  { %v481_v54 = vrot.slane %v431_v45, 4  ;;  %v957_v6 = vmul.f32 -1.442695, %v431_v45 }
 0x1dd   :  { %v478_v49 = vsel %vm460_vm5, %v431_v45, %v472_v46  ;;  %v483_v50 = vsel %vm460_vm5, %v472_v46, %v474_v47 }
 0x1de   :  { %v479_v51 = vsel %vm462_vm6, %v478_v49, %v474_v47  ;;  %v484_v53 = vsel %vm462_vm6, %v483_v50, %v476_v48  ;;  %1326 = vpow2.f32 %v957_v6 }
 0x1df   :  { %v480_v52 = vsel %vm464_vm7, %v479_v51, %v476_v48  ;;  %v485_v60 = vsel %vm464_vm7, %v484_v53, %v481_v54 }
 0x1e0   :  { %584 = vrot.lane.b32.xlu1 %v480_v52, %s1385_s2 }
 0x1e4   :  { %594 = vrot.lane.b32.xlu1 %v485_v60, %s1386_s3 }
 0x1e5   :  { %v1325_v0 = vpop.eup %1324 }
 0x1e6   :  { %440 = vrot.lane.b32.xlu0 %v1325_v0, %s1385_s2 }
 0x1e8   :  { %v1327_v8 = vpop.eup %1326 }
 0x1e9   :  { %v435_v9 = vadd.f32 1.0, %v1327_v8 }
 0x1eb   :  { %1328 = vrcp.f32 %v435_v9 }
 0x1f5   :  { %v1329_v10 = vpop.eup %1328 }
 0x252   :  { %v585_v37 = vpop.permute.xlu1 %584 }
 0x256   :  { %v595_v39 = vpop.permute.xlu1 %594 }
 0x258   :  { %v441_v11 = vpop.permute.xlu0 %440 }
 0x259   :  { %v443_v12 = vmul.f32 %v1329_v10, %v441_v11 }
 0x25b   :  { %v454_v13 = vrot.slane %v443_v12, 1  ;;  %v456_v14 = vrot.slane %v443_v12, 2  ;;  %v458_v15 = vrot.slane %v443_v12, 3  ;;  %v466_v17 = vrot.slane %v443_v12, 4 }
 0x25d   :  { %v461_v16 = vsel %vm460_vm5, %v443_v12, %v454_v13  ;;  %v468_v18 = vsel %vm460_vm5, %v454_v13, %v456_v14 }
 0x25e   :  { %v463_v19 = vsel %vm462_vm6, %v461_v16, %v456_v14  ;;  %v469_v20 = vsel %vm462_vm6, %v468_v18, %v458_v15 }
 0x25f   :  { %v465_v21 = vsel %vm464_vm7, %v463_v19, %v458_v15  ;;  %v470_v22 = vsel %vm464_vm7, %v469_v20, %v466_v17 }
 0x260   :  { %487 = vrot.lane.b32.xlu0 %v465_v21, %s1387_s9 }
 0x2d2   :  { %v488_v23 = vpop.permute.xlu0 %487 }
 0x2d3   :  { %v490_v24 = vsel %vm74_vm1, %v488_v23, %v470_v22 }
 0x2d4   :  { %1140 = vmatmul.mubr.msk.f32.vlgmr.msra.gmra.mrb[4].mxu1 %vm497_vm8, %v490_v24 }
 0x2d5   :  { %1301 = vmatpush3.bf16.msra.mxu1 %v1276_v58  ;;  %1177 = vmatprep.mubr.msk.f32.mxu1 %vm1383_vm0, %v1384_v7 }
 0x2d6   :  { %1302 = vmatprep.subr.bf16.mxu1 %v1382_v3 }
 0x2d9   :  { %1304 = vmatpush3.bf16.msra.mxu1 %v1279_v61 }
 0x2da   :  { %1305 = vmatprep.subr.bf16.mxu1 %v1382_v3 }
 0x2dd   :  { %1307 = vmatpush3.bf16.msra.mxu1 %v1282_v1 }
 0x2de   :  { %1308 = vmatprep.subr.bf16.mxu1 %v1382_v3 }
 0x2e1   :  { %1310 = vmatpush3.bf16.msra.mxu1 %v1285_v5 }
 0x3a7   :  { %v567_v30 = vpop.f32.mrb[4].mxu1 }
 0x3a8   :  { %v568_v31 = vadd.f32 %v567_v30, %v495_v29  ;;  %v1141_v32 = vpop.f32.mrb[5].mxu1  ;;  %v844_v30 = vld [vmem:[%s1824_s11 + $0x18] sm:$0xff] }
 0x3aa   :  { %v959_v33 = vmul.f32 -1.442695, %v568_v31  ;;  %1330 = vtanh.f32 %v568_v31 }
 0x3ac   :  { %1332 = vpow2.f32 %v959_v33 }
 0x3b4   :  { %v1331_v34 = vpop.eup %1330 }
 0x3b5   :  { %579 = vrot.lane.b32.xlu0 %v1331_v34, %s1385_s2 }
 0x3b6   :  { %v1333_v35 = vpop.eup %1332 }
 0x3b7   :  { %v574_v36 = vadd.f32 1.0, %v1333_v35 }
 0x3b9   :  { %1334 = vrcp.f32 %v574_v36 }
 0x3c3   :  { %v1335_v38 = vpop.eup %1334 }
 0x3c4   :  { %v597_v40 = vmul.f32 %v1335_v38, %v595_v39  ;;  %v587_v41 = vmul.f32 %v1335_v38, %v585_v37 }
 0x3c6   :  { %599 = vrot.lane.b32.xlu0 %v597_v40, %s1386_s3  ;;  %589 = vrot.lane.b32.xlu1 %v587_v41, %s1387_s9 }
 0x427   :  { %v580_v42 = vpop.permute.xlu0 %579 }
 0x428   :  { %v582_v43 = vmul.f32 %v1335_v38, %v580_v42 }
 0x438   :  { %v590_v44 = vpop.permute.xlu1 %589  ;;  %v600_v46 = vpop.permute.xlu0 %599 }
 0x439   :  { %v592_v45 = vadd.f32 %v590_v44, %v582_v43 }
 0x43b   :  { %v602_v47 = vadd.f32 %v600_v46, %v592_v45 }
 0x43d   :  { %1336 = vtanh.f32 %v602_v47  ;;  %v612_v48 = vrot.slane %v602_v47, 1  ;;  %v615_v54 = vrot.slane %v602_v47, 2 }
 0x43f   :  { %v614_v49 = vsel %vm460_vm5, %v602_v47, %v612_v48  ;;  %v617_v56 = vsel %vm460_vm5, %v612_v48, %v615_v54 }
 0x440   :  { %709 = vrot.lane.b32.xlu0 %v614_v49, %s1385_s2 }
 0x447   :  { %v1337_v50 = vpop.eup %1336 }
 0x448   :  { %v605_v51 = vrot.slane %v1337_v50, 1  ;;  %v608_v52 = vrot.slane %v1337_v50, 2 }
 0x44a   :  { %v610_v53 = vsel %vm460_vm5, %v605_v51, %v608_v52  ;;  %v607_v55 = vsel %vm460_vm5, %v1337_v50, %v605_v51 }
 0x44b   :  { %619 = vrot.lane.b32.xlu1 %v610_v53, %s1385_s2 }
 0x44f   :  { %719 = vrot.lane.b32.xlu1 %v617_v56, %s1386_s3 }
 0x4b2   :  { %v710_v4 = vpop.permute.xlu0 %709 }
 0x4bd   :  { %v620_v57 = vpop.permute.xlu1 %619 }
 0x4be   :  { %v622_v58 = vsel %vm74_vm1, %v607_v55, %v620_v57 }
 0x4bf   :  { %1159 = vmatmul.mubr.msk.f32.vlgmr.msra.gmra.mrb[4].mxu0 %vm497_vm8, %v622_v58 }
 0x4c0   :  { %1188 = vmatprep.mubr.msk.f32.mxu0 %vm1383_vm0, %v1384_v7 }
 0x4c1   :  { %v720_v5 = vpop.permute.xlu1 %719 }
 0x592   :  { %v692_v59 = vpop.f32.mrb[4].mxu0 }
 0x593   :  { %v693_v60 = vadd.f32 %v692_v59, %v495_v29  ;;  %v1160_v61 = vpop.f32.mrb[5].mxu0  ;;  %v1312_v29 = vpack.c.bf16 %v842_v27, %v841_v26 }
 0x595   :  { %v961_v62 = vmul.f32 -1.442695, %v693_v60  ;;  %1338 = vtanh.f32 %v693_v60  ;;  %1313 = vmatpush3.bf16.msra.mxu0 %v1312_v29 }
 0x596   :  { %1314 = vmatprep.subr.bf16.mxu0 %v1382_v3  ;;  %v845_v3 = vld [vmem:[%s1825_s12] sm:$0x1]  ;;  %s1388_s12 = smov [#allocation2]  }
 0x597   :  { %1340 = vpow2.f32 %v961_v62  ;;  %s940_s20 = sshll.u32 %s1388_s12, 4  ;;  %s941_s20 = int_to_ptr.vmem [resolvable:$true] %s940_s20 }
 0x598   :  { %s1358_s21 = scalar_lea.vmem %s941_s20, 16  ;;  %s1362_s22 = scalar_lea.vmem %s941_s20, 32 }
 0x599   :  { %p1359_p0 = scmp.ne.s32.totalorder %s941_s20, %s1358_s21  ;;  %p1363_p1 = scmp.lt.s32.totalorder %s941_s20, %s941_s20 }
 0x59a   :  { %p1364_p2 = scmp.lt.s32.totalorder %s1362_s22, %s1358_s21 }
 0x59c   :  { %p1365_p3 = por %p1364_p2, %p1363_p1 }
 0x59e   :  { %p1366_p4 = pnand %p1365_p3, %p1359_p0 }
 0x59f   :  { %v1339_v63 = vpop.eup %1338 }
 0x5a0   :  { %704 = vrot.lane.b32.xlu0 %v1339_v63, %s1385_s2 }
 0x5a1   :  { %v1341_v0 = vpop.eup %1340 }
 0x5a2   :  { %v699_v1 = vadd.f32 1.0, %v1341_v0 }
 0x5a4   :  { %1342 = vrcp.f32 %v699_v1 }
 0x5ae   :  { %v1343_v2 = vpop.eup %1342 }
 0x5af   :  { %v722_v6 = vmul.f32 %v1343_v2, %v720_v5  ;;  %v712_v8 = vmul.f32 %v1343_v2, %v710_v4 }
 0x5b1   :  { %724 = vrot.lane.b32.xlu0 %v722_v6, %s1386_s3  ;;  %714 = vrot.lane.b32.xlu1 %v712_v8, %s1387_s9 }
 0x612   :  { %v705_v7 = vpop.permute.xlu0 %704 }
 0x613   :  { %v707_v9 = vmul.f32 %v1343_v2, %v705_v7 }
 0x623   :  { %v715_v10 = vpop.permute.xlu1 %714  ;;  %v725_v12 = vpop.permute.xlu0 %724 }
 0x624   :  { %v717_v11 = vadd.f32 %v715_v10, %v707_v9 }
 0x626   :  { %v727_v13 = vadd.f32 %v725_v12, %v717_v11 }
 0x628   :  { %1344 = vtanh.f32 %v727_v13  ;;  %821 = vrot.lane.b32.xlu0 %v727_v13, %s1385_s2  ;;  %v830_v16 = vrot.slane %v727_v13, 1 }
 0x632   :  { %v1345_v14 = vpop.eup %1344 }
 0x633   :  { %v730_v15 = vrot.slane %v1345_v14, 1 }
 0x635   :  { %731 = vrot.lane.b32.xlu1 %v730_v15, %s1385_s2 }
 0x639   :  { %831 = vrot.lane.b32.xlu1 %v830_v16, %s1386_s3 }
 0x69a   :  { %v822_v33 = vpop.permute.xlu0 %821 }
 0x6a7   :  { %v732_v17 = vpop.permute.xlu1 %731 }
 0x6a8   :  { %v734_v18 = vsel %vm74_vm1, %v1345_v14, %v732_v17 }
 0x6a9   :  { %1178 = vmatmul.mubr.msk.f32.vlgmr.msra.gmra.mrb[6].mxu1 %vm497_vm8, %v734_v18 }
 0x6ab   :  { %v832_v34 = vpop.permute.xlu1 %831 }
 0x77c   :  { %v804_v19 = vpop.f32.mrb[6].mxu1 }
 0x77d   :  { %v805_v20 = vadd.f32 %v804_v19, %v1752_v28  ;;  %v1179_v21 = vpop.f32.mrb[7].mxu1  ;;  %v843_v28 = vld [vmem:[%s1824_s11 + $0x10] sm:$0xff] }
 0x77e   :  { %v1315_v31 = vpack.c.bf16 %v844_v30, %v843_v28 }
 0x77f   :  { %v963_v22 = vmul.f32 -1.442695, %v805_v20  ;;  %1346 = vtanh.f32 %v805_v20 }
 0x780   :  { %1316 = vmatpush3.bf16.msra.mxu0 %v1315_v31 }
 0x781   :  { %1348 = vpow2.f32 %v963_v22 }
 0x789   :  { %v1347_v23 = vpop.eup %1346 }
 0x78a   :  { %816 = vrot.lane.b32.xlu0 %v1347_v23, %s1385_s2 }
 0x78b   :  { %v1349_v24 = vpop.eup %1348 }
 0x78c   :  { %v811_v25 = vadd.f32 1.0, %v1349_v24 }
 0x78e   :  { %1350 = vrcp.f32 %v811_v25 }
 0x798   :  { %v1351_v32 = vpop.eup %1350 }
 0x799   :  { %v824_v35 = vmul.f32 %v1351_v32, %v822_v33  ;;  %v834_v36 = vmul.f32 %v1351_v32, %v832_v34 }
 0x79b   :  { %826 = vrot.lane.b32.xlu1 %v824_v35, %s1387_s9  ;;  %836 = vrot.lane.b32.xlu0 %v834_v36, %s1386_s3 }
 0x7fc   :  { %v817_v37 = vpop.permute.xlu0 %816 }
 0x7fd   :  { %v819_v38 = vmul.f32 %v1351_v32, %v817_v37 }
 0x80d   :  { %v827_v39 = vpop.permute.xlu1 %826  ;;  %v837_v41 = vpop.permute.xlu0 %836 }
 0x80e   :  { %v829_v40 = vadd.f32 %v827_v39, %v819_v38 }
 0x810   :  { %v839_v42 = vadd.f32 %v837_v41, %v829_v40 }
 0x812   :  { %1352 = vtanh.f32 %v839_v42 }
 0x81c   :  { %v1353_v43 = vpop.eup %1352 }
 0x81d   :  { %1189 = vmatmul.mubr.msk.f32.vlgmr.msra.gmra.mrb[6].mxu0 %vm74_vm1, %v1353_v43 }
 0x8f0   :  { %v915_v44 = vpop.f32.mrb[6].mxu0 }
 0x8f1   :  { %v916_v45 = vadd.f32 %v915_v44, %v845_v3  ;;  %v1190_v46 = vpop.f32.mrb[7].mxu0 }
 0x8f3   :  { %v920_v47 = vsel %vm919_vm9, %v916_v45, -inf }
 0x8f4   :  { %921 = vmax.xlane.f32.xlu1 %v920_v47 }
 0x981   :  { %v922_v48 = vpop.xlane.xlu1 %921 }
 0x982   :  { %v923_v49 = vsub.f32 %v916_v45, %v922_v48 }
 0x984   :  { %v924_v50 = vmul.f32 1.442695, %v923_v49 }
 0x986   :  { %1354 = vpow2.f32 %v924_v50 }
 0x990   :  { %v1355_v51 = vpop.eup %1354 }
 0x991   :  { %v926_v52 = vsel %vm919_vm9, %v1355_v51, 0.0 }
 0x992   :  { %927 = vadd.xlane.f32.xlu0 %v926_v52 }
 0xa1f   :  { %v928_v53 = vpop.xlane.xlu0 %927 }
 0xa20   :  { %1356 = vlog2.f32 %v928_v53 }
 0xa2a   :  { %v1357_v54 = vpop.eup %1356 }
 0xa2b   :  { %v930_v55 = vmul.f32 0.6931472, %v1357_v54 }
 0xa2d   :  { %v931_v56 = vadd.f32 %v930_v55, %v922_v48 }
 0xa2f   :  { %v932_v57 = vsub.f32 %v916_v45, %v931_v56 }
 0xa31   :  { %933 = vst.msk [vmem:[#allocation2] sm:$0x1] %vm919_vm9, %v932_v57 }
 0xa32   :  { %1369 = shalt.err (!%p1366_p4)
}
 0xa33   :  { %s1370_s24 = scalar_lea.hbm %s1826_s13, 16 }
 0xa34   :  { %p1371_p5 = scmp.ne.s32.totalorder %s1826_s13, %s1370_s24  ;;  %p1374_p6 = scmp.lt.u32.totalorder %s1370_s24, %s1826_s13 }
 0xa36   :  { %p1376_p7 = pnand %p1374_p6, %p1371_p5 }
 0xa38   :  { %1379 = shalt.err (!%p1376_p7)
}
 0xa39   :  { %943 = dma.vmem_to_hbm [thread:$0]  %s941_s20, 16, %s1826_s13, [#allocation3]  }
 0xa3a   :  { %1380 = dma.done.wait [#allocation3], 16  }
 0xa3b   :  { %1381 = vsyncadd [#allocation3], 4294967280 }
 0xa3c   :  { %947 = vsyncpa [#allocation3], 1 }

</bundles_post_ra>
